<compile_context>
chip_gen: v7x
topology: tpu7x:2x2x1
jax: 0.10.0
libtpu: 0.0.40
codegen_flags: <defaults>
</compile_context>

<pallas_src>
import functools

import jax
import jax.numpy as jnp
import numpy as np
from jax.experimental import pallas as pl
from jax.experimental.pallas import tpu as pltpu


_LANE = 128
_VMEM = pl.BlockSpec(memory_space=pltpu.MemorySpace.VMEM)


def _round_up(x, m):
    return (x + m - 1) // m * m


# ------------------------------ fused kernel -------------------------------

def _fused_step_kernel(n_cells, H, ids_ref, emb_ref, state_ref, *args):
    """One full MultiLSTM step: embedding + all LSTM cells + output linear.

    args = (w_cat_0, bias_0, ..., w_cat_{n-1}, bias_{n-1},
            out_w_pad, out_b_pad,            # remaining inputs
            new_state_ref, fc_ref)           # outputs
    """
    cell_refs = args[:2 * n_cells]
    out_w_ref = args[2 * n_cells]
    out_b_ref = args[2 * n_cells + 1]
    new_state_ref = args[2 * n_cells + 2]
    fc_ref = args[2 * n_cells + 3]

    B = state_ref.shape[0]
    voc = emb_ref.shape[0]

    # Embedding lookup as a one-hot matmul: exact (single 1.0 per row) and it
    # keeps the gather fused inside the kernel on the MXU.
    ids = ids_ref[...]                                            # (B, 1) int32
    col = jax.lax.broadcasted_iota(jnp.int32, (B, voc), 1)
    onehot = jnp.where(col == ids, 1.0, 0.0).astype(jnp.float32)  # (B, voc)
    x = jnp.dot(onehot, emb_ref[...],
                preferred_element_type=jnp.float32)               # (B, emb)

    state = state_ref[...]                                        # (B, 2*n*H)

    # Gate columns are pre-permuted to [i, f, o, g]: sigmoid on the first 3H
    # lanes, tanh on the last H.  Full-vreg transcendentals + one lane select.
    lane = jax.lax.broadcasted_iota(jnp.int32, (B, 4 * H), 1)
    sig_lanes = lane < 3 * H

    new_h = []
    new_c = []
    for l in range(n_cells):
        w_ref = cell_refs[2 * l]        # (in_l + H, 4H), columns [i,f,o,g]
        b_ref = cell_refs[2 * l + 1]    # (1, 4H)
        h = state[:, l * H:(l + 1) * H]
        c = state[:, (n_cells + l) * H:(n_cells + l + 1) * H]

        xh = jnp.concatenate([x, h], axis=1)                      # (B, in_l+H)
        gates = jnp.dot(xh, w_ref[...],
                        preferred_element_type=jnp.float32) + b_ref[...]
        act = jnp.where(sig_lanes, jax.nn.sigmoid(gates), jnp.tanh(gates))

        i_g = act[:, 0 * H:1 * H]
        f_g = act[:, 1 * H:2 * H]
        o_g = act[:, 2 * H:3 * H]
        g_g = act[:, 3 * H:4 * H]
        c_n = f_g * c + i_g * g_g
        h_n = o_g * jnp.tanh(c_n)
        new_h.append(h_n)
        new_c.append(c_n)
        x = h_n                                                   # feeds next cell

    # Single lane-dense state store (B, 2*n*H) and lane-padded logits store.
    new_state_ref[...] = jnp.concatenate(new_h + new_c, axis=1)
    fc_ref[...] = (jnp.dot(new_h[-1], out_w_ref[...],
                           preferred_element_type=jnp.float32) + out_b_ref[...])


# --------------------------- parameter creation ----------------------------

def init_multilstm_params(key, emb_size, voc_size, hidden_layer_units):
    """Raw PyTorch-shaped parameters (what nn.LSTMCell / nn.Linear would hold)."""
    n_cells = len(hidden_layer_units) - 1
    keys = jax.random.split(key, 3 + 4 * n_cells)
    it = iter(keys)

    params = {"emb": jax.random.normal(next(it), (voc_size, emb_size),
                                       dtype=jnp.float32)}
    cells = []
    in_feat = emb_size
    for li in range(n_cells):
        H = hidden_layer_units[li]
        s = 1.0 / np.sqrt(H)
        cells.append({
            "w_ih": jax.random.uniform(next(it), (4 * H, in_feat), jnp.float32, -s, s),
            "w_hh": jax.random.uniform(next(it), (4 * H, H), jnp.float32, -s, s),
            "b_ih": jax.random.uniform(next(it), (4 * H,), jnp.float32, -s, s),
            "b_hh": jax.random.uniform(next(it), (4 * H,), jnp.float32, -s, s),
        })
        in_feat = H
    params["cells"] = cells

    H_last = hidden_layer_units[-1]
    s = 1.0 / np.sqrt(H_last)
    params["w_out"] = jax.random.uniform(next(it), (voc_size, H_last),
                                         jnp.float32, -s, s)
    params["b_out"] = jax.random.uniform(next(it), (voc_size,), jnp.float32, -s, s)
    return params


def _perm_ifgo_to_ifog(a):
    """Permute the leading 4H axis from torch gate order [i,f,g,o] to [i,f,o,g]."""
    H = a.shape[0] // 4
    return jnp.concatenate([a[:2 * H], a[3 * H:4 * H], a[2 * H:3 * H]], axis=0)


def prepare_kernel_params(params):
    """Kernel layout: stacked (in+H, 4H) weights with gate columns [i,f,o,g],
    fused (1, 4H) bias rows, and a 128-lane-padded output head."""
    cells = []
    for c in params["cells"]:
        w_ih = _perm_ifgo_to_ifog(c["w_ih"])          # (4H, in)
        w_hh = _perm_ifgo_to_ifog(c["w_hh"])          # (4H, H)
        bias = _perm_ifgo_to_ifog(c["b_ih"] + c["b_hh"])  # (4H,)
        w_cat = jnp.concatenate([w_ih.T, w_hh.T], axis=0)  # (in + H, 4H)
        cells.append({"w_cat": w_cat, "bias": bias.reshape(1, -1)})

    voc, H_last = params["w_out"].shape
    voc_pad = _round_up(max(voc, _LANE), _LANE)
    w_out_pad = jnp.zeros((H_last, voc_pad), jnp.float32).at[:, :voc].set(
        params["w_out"].T)
    b_out_pad = jnp.zeros((1, voc_pad), jnp.float32).at[:, :voc].set(
        params["b_out"])
    return {"emb": params["emb"], "cells": cells,
            "out_w_pad": w_out_pad, "out_b_pad": b_out_pad}


# ------------------------------ forward pass -------------------------------

def multilstm_forward(kparams, x, hs, cs):
    """x: (B,) int token ids; hs/cs: lists of (B, H) float32.

    Returns (fc_out (B, voc), hs_new, cs_new).  Entire step = one pallas_call.
    """
    n_cells = len(hs)
    B, H = hs[0].shape
    assert all(h.shape == (B, H) for h in hs) and all(c.shape == (B, H) for c in cs), \
        "fused kernel assumes a uniform hidden size across cells"
    voc = kparams["emb"].shape[0]
    voc_pad = kparams["out_w_pad"].shape[1]
    state_w = 2 * n_cells * H

    ids = x.reshape(B, 1).astype(jnp.int32)
    state = jnp.concatenate(list(hs) + list(cs), axis=1)      # (B, 2*n*H)

    inputs = [ids, kparams["emb"], state]
    for cell in kparams["cells"]:
        inputs.append(cell["w_cat"])
        inputs.append(cell["bias"])
    inputs.append(kparams["out_w_pad"])
    inputs.append(kparams["out_b_pad"])

    new_state, fc_pad = pl.pallas_call(
        functools.partial(_fused_step_kernel, n_cells, H),
        out_shape=(jax.ShapeDtypeStruct((B, state_w), jnp.float32),
                   jax.ShapeDtypeStruct((B, voc_pad), jnp.float32)),
        in_specs=[_VMEM] * len(inputs),
        out_specs=(_VMEM, _VMEM),
        input_output_aliases={2: 0},   # old packed state is dead -> reuse buffer
    )(*inputs)

    hs_new = [new_state[:, l * H:(l + 1) * H] for l in range(n_cells)]
    cs_new = [new_state[:, (n_cells + l) * H:(n_cells + l + 1) * H]
              for l in range(n_cells)]
    return fc_pad[:, :voc], hs_new, cs_new


# ------------------------- pure-JAX reference check ------------------------

def _lstm_cell_ref(x, h, c, w_ih, w_hh, b_ih, b_hh):
    gates = x @ w_ih.T + h @ w_hh.T + b_ih + b_hh
    H = h.shape[-1]
    i_g = jax.nn.sigmoid(gates[:, 0 * H:1 * H])
    f_g = jax.nn.sigmoid(gates[:, 1 * H:2 * H])
    g_g = jnp.tanh(gates[:, 2 * H:3 * H])
    o_g = jax.nn.sigmoid(gates[:, 3 * H:4 * H])
    c_new = f_g * c + i_g * g_g
    return o_g * jnp.tanh(c_new), c_new


def multilstm_forward_ref(params, x, hs, cs):
    emb_x = params["emb"][x]
    hs = list(hs)
    cs = list(cs)
    c0 = params["cells"][0]
    hs[0], cs[0] = _lstm_cell_ref(emb_x, hs[0], cs[0],
                                  c0["w_ih"], c0["w_hh"], c0["b_ih"], c0["b_hh"])
    for i in range(1, len(hs)):
        ci = params["cells"][i]
        hs[i], cs[i] = _lstm_cell_ref(hs[i - 1], hs[i], cs[i],
                                      ci["w_ih"], ci["w_hh"], ci["b_ih"], ci["b_hh"])
    fc_out = hs[-1] @ params["w_out"].T + params["b_out"]
    return fc_out, hs, cs


# ----------------------------------- main -----------------------------------

if __name__ == "__main__":
    B = 8
    EMB = 16
    VOC = 32
    HIDDEN_UNITS = [32, 32, 32]      # -> 2 LSTM cells (32, 32), out Linear(32 -> 32)
    N_CELLS = len(HIDDEN_UNITS) - 1

    key = jax.random.PRNGKey(0)
    k_params, k_x, k_h, k_c = jax.random.split(key, 4)

    params = init_multilstm_params(k_params, EMB, VOC, HIDDEN_UNITS)
    kparams = prepare_kernel_params(params)

    x = jax.random.randint(k_x, (B,), 0, VOC, dtype=jnp.int32)
    hkeys = jax.random.split(k_h, N_CELLS)
    ckeys = jax.random.split(k_c, N_CELLS)
    hs = [jax.random.normal(hkeys[i], (B, HIDDEN_UNITS[i]), dtype=jnp.float32)
          for i in range(N_CELLS)]
    cs = [jax.random.normal(ckeys[i], (B, HIDDEN_UNITS[i]), dtype=jnp.float32)
          for i in range(N_CELLS)]

    fwd = jax.jit(multilstm_forward)
    fc_out, hs_new, cs_new = fwd(kparams, x, hs, cs)
    jax.block_until_ready(fc_out)

    fc_ref, hs_ref, cs_ref = multilstm_forward_ref(params, x, hs, cs)
    np.testing.assert_allclose(np.asarray(fc_out), np.asarray(fc_ref),
                               rtol=1e-5, atol=1e-5)
    for a, b in zip(hs_new, hs_ref):
        np.testing.assert_allclose(np.asarray(a), np.asarray(b), rtol=1e-5, atol=1e-5)
    for a, b in zip(cs_new, cs_ref):
        np.testing.assert_allclose(np.asarray(a), np.asarray(b), rtol=1e-5, atol=1e-5)

    print("KERNEL_OK")
</pallas_src>

<mosaic_0001>
module attributes {stable_mosaic.version = 11 : i64} {
  func.func @_fused_step_kernel(%arg0: memref<8x1xi32, #tpu.memory_space<vmem>>, %arg1: memref<32x16xf32, #tpu.memory_space<vmem>>, %arg2: memref<8x128xf32, #tpu.memory_space<vmem>>, %arg3: memref<48x128xf32, #tpu.memory_space<vmem>>, %arg4: memref<1x128xf32, #tpu.memory_space<vmem>>, %arg5: memref<64x128xf32, #tpu.memory_space<vmem>>, %arg6: memref<1x128xf32, #tpu.memory_space<vmem>>, %arg7: memref<32x128xf32, #tpu.memory_space<vmem>>, %arg8: memref<1x128xf32, #tpu.memory_space<vmem>>, %arg9: memref<8x128xf32, #tpu.memory_space<vmem>>, %arg10: memref<8x128xf32, #tpu.memory_space<vmem>>) attributes {dimension_semantics = [], scalar_prefetch = 0 : i64, scratch_operands = 0 : i64, tpu.core_type = #tpu.core_type<tc>} {
    %c0 = arith.constant 0 : index
    %c0_0 = arith.constant 0 : index
    %0 = vector.load %arg0[%c0, %c0_0] : memref<8x1xi32, #tpu.memory_space<vmem>>, vector<8x1xi32>
    %1 = tpu.iota {dimensions = array<i32: 1>} : vector<8x32xi32>
    %2 = vector.broadcast %0 : vector<8x1xi32> to vector<8x32xi32>
    %3 = arith.cmpi eq, %1, %2 : vector<8x32xi32>
    %cst = arith.constant 1.000000e+00 : f32
    %cst_1 = arith.constant 0.000000e+00 : f32
    %4 = vector.broadcast %cst : f32 to vector<8x32xf32>
    %5 = vector.broadcast %cst_1 : f32 to vector<8x32xf32>
    %6 = arith.select %3, %4, %5 : vector<8x32xi1>, vector<8x32xf32>
    %c0_2 = arith.constant 0 : index
    %c0_3 = arith.constant 0 : index
    %7 = vector.load %arg1[%c0_2, %c0_3] : memref<32x16xf32, #tpu.memory_space<vmem>>, vector<32x16xf32>
    %cst_4 = arith.constant dense<0.000000e+00> : vector<8x16xf32>
    %8 = tpu.matmul %6, %7, %cst_4 {dimension_numbers = #tpu.dot_dimension_numbers<[1], [0], [0], [1], [0, 0, 1, 1], [], []>} : vector<8x32xf32>, vector<32x16xf32>, vector<8x16xf32> -> vector<8x16xf32>
    %c0_5 = arith.constant 0 : index
    %c0_6 = arith.constant 0 : index
    %9 = vector.load %arg2[%c0_5, %c0_6] : memref<8x128xf32, #tpu.memory_space<vmem>>, vector<8x128xf32>
    %10 = tpu.iota {dimensions = array<i32: 1>} : vector<8x128xi32>
    %c96_i32 = arith.constant 96 : i32
    %11 = vector.broadcast %c96_i32 : i32 to vector<8x128xi32>
    %12 = arith.cmpi slt, %10, %11 : vector<8x128xi32>
    %13 = vector.extract_strided_slice %9 {offsets = [0, 0], sizes = [8, 32], strides = [1, 1]} : vector<8x128xf32> to vector<8x32xf32>
    %14 = vector.extract_strided_slice %9 {offsets = [0, 64], sizes = [8, 32], strides = [1, 1]} : vector<8x128xf32> to vector<8x32xf32>
    %15 = tpu.concatenate %8, %13 in 1 : vector<8x16xf32>, vector<8x32xf32> -> vector<8x48xf32>
    %c0_7 = arith.constant 0 : index
    %c0_8 = arith.constant 0 : index
    %16 = vector.load %arg3[%c0_7, %c0_8] : memref<48x128xf32, #tpu.memory_space<vmem>>, vector<48x128xf32>
    %cst_9 = arith.constant dense<0.000000e+00> : vector<8x128xf32>
    %17 = tpu.matmul %15, %16, %cst_9 {dimension_numbers = #tpu.dot_dimension_numbers<[1], [0], [0], [1], [0, 0, 1, 1], [], []>} : vector<8x48xf32>, vector<48x128xf32>, vector<8x128xf32> -> vector<8x128xf32>
    %c0_10 = arith.constant 0 : index
    %c0_11 = arith.constant 0 : index
    %18 = vector.load %arg4[%c0_10, %c0_11] : memref<1x128xf32, #tpu.memory_space<vmem>>, vector<1x128xf32>
    %19 = vector.broadcast %18 : vector<1x128xf32> to vector<8x128xf32>
    %20 = arith.addf %17, %19 : vector<8x128xf32>
    %21 = arith.negf %20 : vector<8x128xf32>
    %22 = math.exp %21 : vector<8x128xf32>
    %cst_12 = arith.constant 1.000000e+00 : f32
    %23 = vector.broadcast %cst_12 : f32 to vector<8x128xf32>
    %24 = arith.addf %23, %22 : vector<8x128xf32>
    %25 = arith.divf %23, %24 : vector<8x128xf32>
    %26 = math.tanh %20 : vector<8x128xf32>
    %27 = arith.select %12, %25, %26 : vector<8x128xi1>, vector<8x128xf32>
    %28 = vector.extract_strided_slice %27 {offsets = [0, 0], sizes = [8, 32], strides = [1, 1]} : vector<8x128xf32> to vector<8x32xf32>
    %29 = vector.extract_strided_slice %27 {offsets = [0, 32], sizes = [8, 32], strides = [1, 1]} : vector<8x128xf32> to vector<8x32xf32>
    %30 = vector.extract_strided_slice %27 {offsets = [0, 64], sizes = [8, 32], strides = [1, 1]} : vector<8x128xf32> to vector<8x32xf32>
    %31 = vector.extract_strided_slice %27 {offsets = [0, 96], sizes = [8, 32], strides = [1, 1]} : vector<8x128xf32> to vector<8x32xf32>
    %32 = arith.mulf %29, %14 : vector<8x32xf32>
    %33 = arith.mulf %28, %31 : vector<8x32xf32>
    %34 = arith.addf %32, %33 : vector<8x32xf32>
    %35 = math.tanh %34 : vector<8x32xf32>
    %36 = arith.mulf %30, %35 : vector<8x32xf32>
    %37 = vector.extract_strided_slice %9 {offsets = [0, 32], sizes = [8, 32], strides = [1, 1]} : vector<8x128xf32> to vector<8x32xf32>
    %38 = vector.extract_strided_slice %9 {offsets = [0, 96], sizes = [8, 32], strides = [1, 1]} : vector<8x128xf32> to vector<8x32xf32>
    %39 = tpu.concatenate %36, %37 in 1 : vector<8x32xf32>, vector<8x32xf32> -> vector<8x64xf32>
    %c0_13 = arith.constant 0 : index
    %c0_14 = arith.constant 0 : index
    %40 = vector.load %arg5[%c0_13, %c0_14] : memref<64x128xf32, #tpu.memory_space<vmem>>, vector<64x128xf32>
    %cst_15 = arith.constant dense<0.000000e+00> : vector<8x128xf32>
    %41 = tpu.matmul %39, %40, %cst_15 {dimension_numbers = #tpu.dot_dimension_numbers<[1], [0], [0], [1], [0, 0, 1, 1], [], []>} : vector<8x64xf32>, vector<64x128xf32>, vector<8x128xf32> -> vector<8x128xf32>
    %c0_16 = arith.constant 0 : index
    %c0_17 = arith.constant 0 : index
    %42 = vector.load %arg6[%c0_16, %c0_17] : memref<1x128xf32, #tpu.memory_space<vmem>>, vector<1x128xf32>
    %43 = vector.broadcast %42 : vector<1x128xf32> to vector<8x128xf32>
    %44 = arith.addf %41, %43 : vector<8x128xf32>
    %45 = arith.negf %44 : vector<8x128xf32>
    %46 = math.exp %45 : vector<8x128xf32>
    %cst_18 = arith.constant 1.000000e+00 : f32
    %47 = vector.broadcast %cst_18 : f32 to vector<8x128xf32>
    %48 = arith.addf %47, %46 : vector<8x128xf32>
    %49 = arith.divf %47, %48 : vector<8x128xf32>
    %50 = math.tanh %44 : vector<8x128xf32>
    %51 = arith.select %12, %49, %50 : vector<8x128xi1>, vector<8x128xf32>
    %52 = vector.extract_strided_slice %51 {offsets = [0, 0], sizes = [8, 32], strides = [1, 1]} : vector<8x128xf32> to vector<8x32xf32>
    %53 = vector.extract_strided_slice %51 {offsets = [0, 32], sizes = [8, 32], strides = [1, 1]} : vector<8x128xf32> to vector<8x32xf32>
    %54 = vector.extract_strided_slice %51 {offsets = [0, 64], sizes = [8, 32], strides = [1, 1]} : vector<8x128xf32> to vector<8x32xf32>
    %55 = vector.extract_strided_slice %51 {offsets = [0, 96], sizes = [8, 32], strides = [1, 1]} : vector<8x128xf32> to vector<8x32xf32>
    %56 = arith.mulf %53, %38 : vector<8x32xf32>
    %57 = arith.mulf %52, %55 : vector<8x32xf32>
    %58 = arith.addf %56, %57 : vector<8x32xf32>
    %59 = math.tanh %58 : vector<8x32xf32>
    %60 = arith.mulf %54, %59 : vector<8x32xf32>
    %61 = tpu.concatenate %36, %60, %34, %58 in 1 : vector<8x32xf32>, vector<8x32xf32>, vector<8x32xf32>, vector<8x32xf32> -> vector<8x128xf32>
    %c0_19 = arith.constant 0 : index
    %c0_20 = arith.constant 0 : index
    %62 = vector.load %arg9[%c0_19, %c0_20] : memref<8x128xf32, #tpu.memory_space<vmem>>, vector<8x128xf32>
    tpu.vector_store %arg9[%c0_19, %c0_20], %61 {strides = array<i32>} : memref<8x128xf32, #tpu.memory_space<vmem>>, vector<8x128xf32>,
    %c0_21 = arith.constant 0 : index
    %c0_22 = arith.constant 0 : index
    %63 = vector.load %arg7[%c0_21, %c0_22] : memref<32x128xf32, #tpu.memory_space<vmem>>, vector<32x128xf32>
    %cst_23 = arith.constant dense<0.000000e+00> : vector<8x128xf32>
    %64 = tpu.matmul %60, %63, %cst_23 {dimension_numbers = #tpu.dot_dimension_numbers<[1], [0], [0], [1], [0, 0, 1, 1], [], []>} : vector<8x32xf32>, vector<32x128xf32>, vector<8x128xf32> -> vector<8x128xf32>
    %c0_24 = arith.constant 0 : index
    %c0_25 = arith.constant 0 : index
    %65 = vector.load %arg8[%c0_24, %c0_25] : memref<1x128xf32, #tpu.memory_space<vmem>>, vector<1x128xf32>
    %66 = vector.broadcast %65 : vector<1x128xf32> to vector<8x128xf32>
    %67 = arith.addf %64, %66 : vector<8x128xf32>
    %c0_26 = arith.constant 0 : index
    %c0_27 = arith.constant 0 : index
    %68 = vector.load %arg10[%c0_26, %c0_27] : memref<8x128xf32, #tpu.memory_space<vmem>>, vector<8x128xf32>
    tpu.vector_store %arg10[%c0_26, %c0_27], %67 {strides = array<i32>} : memref<8x128xf32, #tpu.memory_space<vmem>>, vector<8x128xf32>,
    return
  }
}

</mosaic_0001>

<bundles_post_ra>
// kernel: multilstm_forward.1
= control target key start
LH: loop header
LB: loop body
LE: loop exit
PB: predicated region body
PF: predicated region fallthrough
CT: control target
= control target key end

     0   :  { %16 = vsyncpa [#allocation3], 0  ;;  %s1010_s0 = inlined_call_operand.vmem [shape: s32[8,1], index: 0, kind: input, shape index: {}]   ;;  %s1011_s1 = inlined_call_operand.vmem [shape: f32[32,16], index: 1, kind: input, shape index: {}]   ;;  %s1012_s2 = inlined_call_operand.vmem [shape: f32[8,128], index: 2, kind: input, shape index: {}, may-alias: {2,9}]   ;;  %s1013_s3 = inlined_call_operand.vmem [shape: f32[48,128], index: 3, kind: input, shape index: {}]   ;;  %s1014_s4 = inlined_call_operand.hbm [shape: f32[1,128], index: 4, kind: input, shape index: {}]   ;;  %s1015_s5 = inlined_call_operand.vmem [shape: f32[64,128], index: 5, kind: input, shape index: {}]   ;;  %s1016_s6 = inlined_call_operand.hbm [shape: f32[1,128], index: 6, kind: input, shape index: {}]   ;;  %s1017_s7 = inlined_call_operand.hbm [shape: f32[32,128], index: 7, kind: input, shape index: {}]   ;;  %s1018_s8 = inlined_call_operand.vmem [shape: f32[1,128], index: 8, kind: input, shape index: {}]   ;;  %s1019_s9 = inlined_call_operand.vmem [shape: f32[8,128], index: 9, kind: output, shape index: {0}, may-alias: {2,9}]   ;;  %s1020_s10 = inlined_call_operand.hbm [shape: f32[8,128], index: 10, kind: output, shape index: {1}]  }
   0x1   :  { %17 = vsyncpa [#allocation6], 0 }
   0x2   :  { %18 = vsyncpa [#allocation4], 0  ;;  %s775_s13 = smov [#allocation5]   ;;  %s776_s15 = smov [#allocation2]  }
   0x3   :  { %s45_s14 = sshll.u32 %s775_s13, 4  ;;  %s33_s16 = sshll.u32 %s776_s15, 4  ;;  %s46_s14 = int_to_ptr.vmem [resolvable:$true] %s45_s14  ;;  %s34_s16 = int_to_ptr.vmem [resolvable:$true] %s33_s16 }
   0x4   :  { %s681_s19 = scalar_lea.hbm %s1016_s6, 16 }
   0x5   :  { %p682_p0 = scmp.ne.s32.totalorder %s1016_s6, %s681_s19  ;;  %p685_p1 = scmp.lt.u32.totalorder %s681_s19, %s1016_s6 }
   0x7   :  { %p687_p2 = pnand %p685_p1, %p682_p0 }
   0x9   :  { %690 = shalt.err (!%p687_p2)
}
   0xa   :  { %s691_s24 = scalar_lea.vmem %s46_s14, 16  ;;  %s695_s25 = scalar_lea.vmem %s46_s14, 32 }
   0xb   :  { %p692_p3 = scmp.ne.s32.totalorder %s46_s14, %s691_s24  ;;  %p696_p4 = scmp.lt.s32.totalorder %s46_s14, %s46_s14 }
   0xc   :  { %p697_p5 = scmp.lt.s32.totalorder %s695_s25, %s691_s24 }
   0xe   :  { %p698_p6 = por %p697_p5, %p696_p4 }
  0x10   :  { %p699_p7 = pnand %p698_p6, %p692_p3 }
  0x12   :  { %702 = shalt.err (!%p699_p7)
}
  0x13   :  { %48 = dma.hbm_to_vmem [thread:$0]  %s1016_s6, 16, %s46_s14, [#allocation6]  }
  0x14   :  { %s703_s30 = scalar_lea.hbm %s1014_s4, 16 }
  0x15   :  { %p704_p8 = scmp.ne.s32.totalorder %s1014_s4, %s703_s30  ;;  %p707_p9 = scmp.lt.u32.totalorder %s703_s30, %s1014_s4 }
  0x17   :  { %p709_p10 = pnand %p707_p9, %p704_p8 }
  0x19   :  { %712 = shalt.err (!%p709_p10)
}
  0x1a   :  { %s713_s17 = scalar_lea.vmem %s34_s16, 16  ;;  %s717_s18 = scalar_lea.vmem %s34_s16, 32 }
  0x1b   :  { %p714_p11 = scmp.ne.s32.totalorder %s34_s16, %s713_s17  ;;  %p718_p12 = scmp.lt.s32.totalorder %s34_s16, %s34_s16 }
  0x1c   :  { %p719_p13 = scmp.lt.s32.totalorder %s717_s18, %s713_s17 }
  0x1e   :  { %p720_p0 = por %p719_p13, %p718_p12 }
  0x20   :  { %p721_p1 = pnand %p720_p0, %p714_p11 }
  0x22   :  { %724 = shalt.err (!%p721_p1)
}
  0x23   :  { %36 = dma.hbm_to_vmem [thread:$0]  %s1014_s4, 16, %s34_s16, [#allocation3]  }
  0x24   :  { %s777_s19 = smov [#allocation7]   ;;  %s725_s23 = scalar_lea.hbm %s1017_s7, 512 }
  0x25   :  { %s54_s20 = sshll.u32 %s777_s19, 4  ;;  %p726_p2 = scmp.ne.s32.totalorder %s1017_s7, %s725_s23  ;;  %s55_s20 = int_to_ptr.vmem [resolvable:$true] %s54_s20 }
  0x26   :  { %p729_p3 = scmp.lt.u32.totalorder %s725_s23, %s1017_s7 }
  0x28   :  { %p731_p4 = pnand %p729_p3, %p726_p2 }
  0x2a   :  { %734 = shalt.err (!%p731_p4)
}
  0x2b   :  { %s735_s28 = scalar_lea.vmem %s55_s20, 512  ;;  %p740_p6 = scmp.lt.s32.totalorder %s55_s20, %s55_s20 }
  0x2c   :  { %p736_p5 = scmp.ne.s32.totalorder %s55_s20, %s735_s28  ;;  %p741_p7 = scmp.lt.s32.totalorder %s735_s28, %s735_s28 }
  0x2e   :  { %p742_p8 = por %p741_p7, %p740_p6 }
  0x30   :  { %p743_p9 = pnand %p742_p8, %p736_p5 }
  0x32   :  { %746 = shalt.err (!%p743_p9)
}
  0x33   :  { %s778_s4 = smov 128   ;;  %s779_s16 = smov 8  }
  0x34   :  { %60 = dma.hbm_to_vmem [thread:$0]  %s1017_s7, 512, %s55_s20, [#allocation6], %s778_s4, %s778_s4, %s779_s16  }
  0x35   :  { %769 = dma.done.wait [#allocation3], 16  }
  0x36   :  { %770 = vsyncadd [#allocation3], 4294967280 }
  0x37   :  { %771 = dma.done.wait [#allocation6], 528  }
  0x38   :  { %772 = vsyncadd [#allocation6], 4294966768  ;;  %v780_v0 = vmov 0   ;;  %v781_v1 = vmov 0.0|0.0   ;;  %v72_v2 = vld [vmem:[%s1010_s0] sm:$0xff]  ;;  %v81_v4 = vld [vmem:[%s1011_s1 + $0x8] sm:$0xff]  ;;  %v73_v20 = vlaneseq }
  0x39   :  { %664 = vset.pattern.permute.xlu0 %v780_v0  ;;  %617 = vmatprep.subr.bf16.mxu0 %v781_v1  ;;  %v80_v3 = vld [vmem:[%s1011_s1] sm:$0xff]  ;;  %v82_v6 = vld [vmem:[%s1011_s1 + $0x10] sm:$0xff]  ;;  %v83_v7 = vld [vmem:[%s1011_s1 + $0x18] sm:$0xff]  ;;  %vm782_vm0 = vmmov 0   ;;  %v783_v8 = vmov 0.0   ;;  %vm84_vm1 = vcmask 261120  }
  0x3a   :  { %623 = vmatprep.subr.bf16.mxu1 %v781_v1  ;;  %76 = vperm.xlu0 %664, %v72_v2   ;;  %v618_v5 = vpack.c.bf16 %v81_v4, %v80_v3  ;;  %v621_v9 = vpack.c.bf16 %v83_v7, %v82_v6  ;;  %v902_v10 = vld [vmem:[%s1012_s2] sm:$0xff]  ;;  %v167_v12 = vld [vmem:[%s1013_s3 + $0x8] sm:$0xff]  ;;  %v168_v14 = vld [vmem:[%s1013_s3 + $0x10] sm:$0xff]  ;;  %s784_s2 = smov 16   ;;  %v928_v21 = vand.u32 127, %v73_v20  ;;  %vm164_vm3 = vcmask 130048  }
  0x3b   :  { %569 = vmatprep.mubr.msk.f32.mxu0 %vm782_vm0, %v783_v8  ;;  %584 = vmatprep.mubr.msk.f32.mxu1 %vm782_vm0, %v783_v8  ;;  %v166_v11 = vld [vmem:[%s1013_s3] sm:$0xff]  ;;  %v169_v15 = vld [vmem:[%s1013_s3 + $0x18] sm:$0xff]  ;;  %v171_v18 = vld [vmem:[%s1013_s3 + $0x28] sm:$0xff]  ;;  %vm179_vm4 = vcmask 392192   ;;  %s786_s30 = smov 96   ;;  %s787_s1 = smov 64  }
  0x3c   :  { %619 = vmatpush3.bf16.msra.mxu0 %v618_v5  ;;  %v624_v13 = vpack.c.bf16 %v167_v12, %v166_v11  ;;  %v627_v16 = vpack.c.bf16 %v169_v15, %v168_v14  ;;  %v170_v17 = vld [vmem:[%s1013_s3 + $0x20] sm:$0xff]  ;;  %vm159_vm5 = vcmp.lt.s32.totalorder %v928_v21, 96  ;;  %s785_s3 = smov 32   ;;  %v287_v45 = vld [vmem:[%s1015_s5 + $0x8] sm:$0xff]  ;;  %v288_v46 = vld [vmem:[%s1015_s5 + $0x10] sm:$0xff]  ;;  %vm301_vm6 = vcmask 523264  }
  0x3d   :  { %620 = vmatprep.subr.bf16.mxu0 %v781_v1  ;;  %v630_v19 = vpack.c.bf16 %v171_v18, %v170_v17  ;;  %v527_v28 = vld [vmem:[#allocation2] ss:$0 sm:$0xff]  ;;  %v289_v48 = vld [vmem:[%s1015_s5 + $0x18] sm:$0xff]  ;;  %v291_v51 = vld [vmem:[%s1015_s5 + $0x28] sm:$0xff]  ;;  %vm417_vm7 = vcmask 785408  }
  0x3e   :  { %161 = vrot.lane.b32.xlu0 %v902_v10, %s784_s2  ;;  %625 = vmatpush3.bf16.msra.mxu1 %v624_v13  ;;  %v286_v44 = vld [vmem:[%s1015_s5] sm:$0xff]  ;;  %v636_v49 = vpack.c.bf16 %v289_v48, %v288_v46  ;;  %v292_v53 = vld [vmem:[%s1015_s5 + $0x30] sm:$0xff]  ;;  %v293_v54 = vld [vmem:[%s1015_s5 + $0x38] sm:$0xff]  ;;  %s788_s2 = smov [#allocation8]  }
  0x3f   :  { %626 = vmatprep.subr.bf16.mxu1 %v781_v1  ;;  %v633_v47 = vpack.c.bf16 %v287_v45, %v286_v44  ;;  %v290_v50 = vld [vmem:[%s1015_s5 + $0x20] sm:$0xff]  ;;  %v642_v56 = vpack.c.bf16 %v293_v54, %v292_v53  ;;  %v421_v15 = vld [vmem:[#allocation7 + $0x8] sm:$0xff]  ;;  %s514_s28 = sshll.u32 %s788_s2, 4  ;;  %s515_s28 = int_to_ptr.vmem [resolvable:$true] %s514_s28 }
  0x40   :  { %622 = vmatpush3.bf16.msra.mxu0 %v621_v9  ;;  %v639_v52 = vpack.c.bf16 %v291_v51, %v290_v50  ;;  %v530_v61 = vld [vmem:[#allocation5] ss:$0 sm:$0xff]  ;;  %v420_v14 = vld [vmem:[#allocation7] sm:$0xff]  ;;  %s747_s4 = scalar_lea.vmem %s515_s28, 128  ;;  %p752_p11 = scmp.lt.s32.totalorder %s515_s28, %s515_s28 }
  0x41   :  { %632 = vmatprep.subr.bf16.mxu0 %v781_v1  ;;  %v645_v17 = vpack.c.bf16 %v421_v15, %v420_v14  ;;  %v423_v18 = vld [vmem:[#allocation7 + $0x18] sm:$0xff]  ;;  %p748_p10 = scmp.ne.s32.totalorder %s515_s28, %s747_s4  ;;  %p753_p12 = scmp.lt.s32.totalorder %s747_s4, %s747_s4 }
  0x42   :  { %628 = vmatpush3.bf16.msra.mxu1 %v627_v16  ;;  %v422_v16 = vld [vmem:[#allocation7 + $0x10] sm:$0xff] }
  0x43   :  { %629 = vmatprep.subr.bf16.mxu1 %v781_v1  ;;  %p754_p13 = por %p753_p12, %p752_p11 }
  0x45   :  { %p755_p0 = pnand %p754_p13, %p748_p10 }
  0x46   :  { %631 = vmatpush3.bf16.msra.mxu1 %v630_v19  ;;  %v648_v19 = vpack.c.bf16 %v423_v18, %v422_v16 }
  0x47   :  { %644 = vmatprep.subr.bf16.mxu1 %v781_v1 }
  0xb9   :  { %v77_v22 = vpop.permute.xlu0 %76 }
  0xba   :  { %vm78_vm2 = vcmp.eq.s32.totalorder %v928_v21, %v77_v22 }
  0xbb   :  { %v79_v23 = vsel %vm78_vm2, 1.0, %v783_v8 }
  0xbc   :  { %570 = vmatmul.mubr.msk.f32.vlgmr.msra.gmra.mrb[0].mxu0 %vm84_vm1, %v79_v23 }
  0xbd   :  { %603 = vmatprep.mubr.msk.f32.mxu0 %vm782_vm0, %v783_v8  ;;  %v162_v24 = vpop.permute.xlu0 %161  ;;  %634 = vmatpush3.bf16.msra.mxu0 %v633_v47 }
  0xbe   :  { %635 = vmatprep.subr.bf16.mxu0 %v781_v1 }
  0xc1   :  { %637 = vmatpush3.bf16.msra.mxu0 %v636_v49 }
  0xc2   :  { %638 = vmatprep.subr.bf16.mxu0 %v781_v1 }
  0xc5   :  { %640 = vmatpush3.bf16.msra.mxu0 %v639_v52 }
  0xc6   :  { %641 = vmatprep.subr.bf16.mxu0 %v781_v1 }
  0xc9   :  { %643 = vmatpush3.bf16.msra.mxu0 %v642_v56 }
 0x18f   :  { %v154_v25 = vpop.f32.mrb[0].mxu0 }
 0x190   :  { %v165_v26 = vsel %vm164_vm3, %v154_v25, %v162_v24  ;;  %v571_v27 = vpop.f32.mrb[1].mxu0 }
 0x191   :  { %585 = vmatmul.mubr.msk.f32.vlgmr.msra.gmra.mrb[0].mxu1 %vm179_vm4, %v165_v26 }
 0x192   :  { %614 = vmatprep.mubr.msk.f32.mxu1 %vm782_vm0, %v783_v8  ;;  %646 = vmatpush3.bf16.msra.mxu1 %v645_v17 }
 0x193   :  { %647 = vmatprep.subr.bf16.mxu1 %v781_v1 }
 0x196   :  { %649 = vmatpush3.bf16.msra.mxu1 %v648_v19 }
 0x264   :  { %v249_v29 = vpop.f32.mrb[0].mxu1 }
 0x265   :  { %v250_v30 = vadd.f32 %v527_v28, %v249_v29  ;;  %v586_v31 = vpop.f32.mrb[1].mxu1  ;;  %v533_v29 = vld [vmem:[%s1018_s8] ss:$0 sm:$0xff] }
 0x267   :  { %v529_v32 = vmul.f32 -1.442695, %v250_v30 }
 0x269   :  { %665 = vpow2.f32 %v529_v32 }
 0x26a   :  { %667 = vtanh.f32 %v250_v30 }
 0x273   :  { %v666_v33 = vpop.eup %665 }
 0x274   :  { %v256_v34 = vadd.f32 1.0, %v666_v33  ;;  %v668_v35 = vpop.eup %667 }
 0x276   :  { %669 = vrcp.f32 %v256_v34 }
 0x280   :  { %v670_v36 = vpop.eup %669 }
 0x281   :  { %v260_v37 = vsel %vm159_vm5, %v670_v36, %v668_v35 }
 0x282   :  { %266 = vrot.lane.b32.xlu1 %v260_v37, %s785_s3 }
 0x286   :  { %261 = vrot.lane.b32.xlu1 %v902_v10, %s786_s30 }
 0x2f4   :  { %v267_v38 = vpop.permute.xlu1 %266 }
 0x2f5   :  { %v269_v39 = vmul.f32 %v267_v38, %v260_v37 }
 0x2f7   :  { %271 = vrot.lane.b32.xlu0 %v269_v39, %s785_s3 }
 0x2f8   :  { %v262_v40 = vpop.permute.xlu1 %261 }
 0x2f9   :  { %v264_v41 = vmul.f32 %v262_v40, %v260_v37 }
 0x369   :  { %v272_v42 = vpop.permute.xlu0 %271 }
 0x36a   :  { %v941_v43 = vadd.f32 %v272_v42, %v264_v41 }
 0x36c   :  { %671 = vtanh.f32 %v941_v43 }
 0x376   :  { %v672_v55 = vpop.eup %671 }
 0x377   :  { %277 = vrot.lane.b32.xlu1 %v672_v55, %s785_s3 }
 0x3e9   :  { %v278_v57 = vpop.permute.xlu1 %277 }
 0x3ea   :  { %v280_v58 = vmul.f32 %v278_v57, %v260_v37 }
 0x3ec   :  { %282 = vrot.lane.b32.xlu0 %v280_v58, %s787_s1 }
 0x3f0   :  { %383 = vrot.lane.b32.xlu0 %v902_v10, %s787_s1 }
 0x45e   :  { %v283_v59 = vpop.permute.xlu0 %282 }
 0x45f   :  { %v285_v60 = vsel %vm84_vm1, %v283_v59, %v902_v10 }
 0x460   :  { %604 = vmatmul.mubr.msk.f32.vlgmr.msra.gmra.mrb[2].mxu0 %vm301_vm6, %v285_v60 }
 0x462   :  { %v384_v10 = vpop.permute.xlu0 %383 }
 0x533   :  { %v371_v62 = vpop.f32.mrb[2].mxu0 }
 0x534   :  { %v372_v63 = vadd.f32 %v530_v61, %v371_v62  ;;  %v605_v0 = vpop.f32.mrb[3].mxu0 }
 0x536   :  { %v532_v2 = vmul.f32 -1.442695, %v372_v63 }
 0x538   :  { %673 = vpow2.f32 %v532_v2 }
 0x539   :  { %675 = vtanh.f32 %v372_v63 }
 0x542   :  { %v674_v3 = vpop.eup %673 }
 0x543   :  { %v378_v4 = vadd.f32 1.0, %v674_v3  ;;  %v676_v5 = vpop.eup %675 }
 0x545   :  { %677 = vrcp.f32 %v378_v4 }
 0x54f   :  { %v678_v6 = vpop.eup %677 }
 0x550   :  { %v382_v7 = vsel %vm159_vm5, %v678_v6, %v676_v5 }
 0x551   :  { %388 = vrot.lane.b32.xlu1 %v382_v7, %s785_s3  ;;  %v386_v11 = vmul.f32 %v384_v10, %v382_v7 }
 0x5c3   :  { %v389_v8 = vpop.permute.xlu1 %388 }
 0x5c4   :  { %v391_v9 = vmul.f32 %v389_v8, %v382_v7 }
 0x5c6   :  { %393 = vrot.lane.b32.xlu1 %v391_v9, %s785_s3 }
 0x638   :  { %v394_v12 = vpop.permute.xlu1 %393 }
 0x639   :  { %v396_v13 = vadd.f32 %v394_v12, %v386_v11 }
 0x63b   :  { %679 = vtanh.f32 %v396_v13 }
 0x645   :  { %v680_v20 = vpop.eup %679 }
 0x646   :  { %399 = vrot.lane.b32.xlu0 %v680_v20, %s785_s3 }
 0x6b8   :  { %v400_v21 = vpop.permute.xlu0 %399 }
 0x6b9   :  { %v402_v22 = vmul.f32 %v400_v21, %v382_v7 }
 0x6bb   :  { %404 = vrot.lane.b32.xlu0 %v402_v22, %s786_s30  ;;  %431 = vrot.lane.b32.xlu1 %v402_v22, %s787_s1 }
 0x6bf   :  { %412 = vrot.lane.b32.xlu0 %v396_v13, %s787_s1  ;;  %408 = vrot.lane.b32.xlu1 %v941_v43, %s785_s3 }
 0x72d   :  { %v405_v23 = vpop.permute.xlu0 %404  ;;  %v432_v24 = vpop.permute.xlu1 %431 }
 0x72e   :  { %615 = vmatmul.mubr.msk.f32.vlgmr.msra.gmra.mrb[2].mxu1 %vm84_vm1, %v432_v24  ;;  %v415_v1 = vsel %vm84_vm1, %v283_v59, %v405_v23 }
 0x731   :  { %v413_v25 = vpop.permute.xlu0 %412  ;;  %v409_v26 = vpop.permute.xlu1 %408 }
 0x732   :  { %v416_v27 = vsel %vm301_vm6, %v415_v1, %v409_v26 }
 0x733   :  { %v418_v28 = vsel %vm417_vm7, %v416_v27, %v413_v25 }
 0x734   :  { %419 = vst [vmem:[%s1019_s9] sm:$0xff] %v418_v28 }
 0x801   :  { %v501_v30 = vpop.f32.mrb[2].mxu1 }
 0x802   :  { %v502_v31 = vadd.f32 %v533_v29, %v501_v30  ;;  %v616_v32 = vpop.f32.mrb[3].mxu1 }
 0x804   :  { %505 = vst [vmem:[#allocation8] sm:$0xff] %v502_v31 }
 0x805   :  { %758 = shalt.err (!%p755_p0)
}
 0x806   :  { %s759_s29 = scalar_lea.hbm %s1020_s10, 128 }
 0x807   :  { %p760_p1 = scmp.ne.s32.totalorder %s1020_s10, %s759_s29  ;;  %p763_p2 = scmp.lt.u32.totalorder %s759_s29, %s1020_s10 }
 0x809   :  { %p765_p3 = pnand %p763_p2, %p760_p1 }
 0x80b   :  { %768 = shalt.err (!%p765_p3)
}
 0x80c   :  { %517 = dma.vmem_to_hbm [thread:$0]  %s515_s28, 128, %s1020_s10, [#allocation4]  }
 0x80d   :  { %773 = dma.done.wait [#allocation4], 128  }
 0x80e   :  { %774 = vsyncadd [#allocation4], 4294967168 }
 0x80f   :  { %523 = vsyncpa [#allocation3], 1 }
 0x810   :  { %524 = vsyncpa [#allocation6], 1 }
 0x811   :  { %525 = vsyncpa [#allocation4], 1 }

</bundles_post_ra>
